<compile_context>
chip_gen: v5e
topology: v5e:2x2
jax: 0.10.0
libtpu: 0.0.40
codegen_flags: <defaults>
</compile_context>

<pallas_src>
import jax
import jax.numpy as jnp
from jax.experimental import pallas as pl
from jax.experimental.pallas import tpu as pltpu


def _pa_kernel(w_ref, b_ref, x_ref, o_ref):
    # w_ref: (C, C) f32 in SMEM (w[c_out, c_in]); b_ref: (C,) f32 in SMEM.
    # x_ref / o_ref: (1, C, T) VMEM tiles with the spatial axis on lanes.
    xf = x_ref[0].astype(jnp.float32)            # (C, T)
    C = xf.shape[0]

    rows = []
    for co in range(C):                          # unrolled: C*C scalar*vector FMAs (VPU)
        acc = xf[0:1, :] * w_ref[co, 0]
        for ci in range(1, C):
            acc = acc + xf[ci:ci + 1, :] * w_ref[co, ci]
        rows.append(acc + b_ref[co])
    y = jax.nn.sigmoid(jnp.concatenate(rows, axis=0))   # (C, T), EUP path

    o_ref[0] = (xf * y).astype(o_ref.dtype)      # pixel-attention gating


def pa_forward(x_nchw, weight, bias, *, block_lanes=None):
    """x_nchw: (N, C, H, W); weight: (C_out, C_in) of the 1x1 conv; bias: (C_out,)."""
    N, C, H, W = x_nchw.shape
    HW = H * W
    LANE = 128

    x3 = x_nchw.reshape(N, C, HW)                # free reshape, no transpose

    # Lane tile: multiple of 128, ~2 MiB of input per block. Double-buffered
    # in+out (~8 MiB) fits v5e's 16 MiB default scoped VMEM and is far under
    # v7x's 64 MiB physical VMEM.
    if block_lanes is None:
        target = (2 * 1024 * 1024) // (C * x3.dtype.itemsize)
        block_lanes = max(LANE, (target // LANE) * LANE)
    hw_pad = pl.cdiv(HW, LANE) * LANE
    block_lanes = min(block_lanes, hw_pad)
    block_lanes = max(LANE, (block_lanes // LANE) * LANE)
    hw_pad = pl.cdiv(hw_pad, block_lanes) * block_lanes

    if hw_pad != HW:                             # ragged tail -> pad (zeros stay zero)
        x3 = jnp.pad(x3, ((0, 0), (0, 0), (0, hw_pad - HW)))

    grid = (N, hw_pad // block_lanes)

    out = pl.pallas_call(
        _pa_kernel,
        out_shape=jax.ShapeDtypeStruct((N, C, hw_pad), x3.dtype),
        grid_spec=pltpu.PrefetchScalarGridSpec(
            num_scalar_prefetch=0,
            grid=grid,
            in_specs=[
                pl.BlockSpec(memory_space=pltpu.MemorySpace.SMEM),          # weight (tiny)
                pl.BlockSpec(memory_space=pltpu.MemorySpace.SMEM),          # bias (tiny)
                pl.BlockSpec((1, C, block_lanes), lambda n, j: (n, 0, j)),  # x tile
            ],
            out_specs=pl.BlockSpec((1, C, block_lanes), lambda n, j: (n, 0, j)),
        ),
        compiler_params=pltpu.CompilerParams(
            dimension_semantics=("parallel", "parallel"),
            vmem_limit_bytes=48 * 1024 * 1024,
        ),
    )(weight.astype(jnp.float32), bias.astype(jnp.float32), x3)

    if hw_pad != HW:
        out = out[:, :, :HW]
    return out.reshape(N, C, H, W)


def _reference(x_nchw, weight, bias):
    # pure-JAX reference of the PyTorch forward
    y = jnp.einsum("nihw,oi->nohw", x_nchw, weight) + bias[None, :, None, None]
    return x_nchw * jax.nn.sigmoid(y)


if __name__ == "__main__":
    key = jax.random.PRNGKey(0)
    k_x, k_w, k_b, k_x2 = jax.random.split(key, 4)

    N, C, H, W = 2, 4, 16, 16                    # nf = 4
    x = jax.random.normal(k_x, (N, C, H, W), dtype=jnp.float32)

    # Deterministic parameter init (same shapes as nn.Conv2d(nf, nf, 1))
    fan_in = C                                   # 1x1 kernel
    bound = 1.0 / (fan_in ** 0.5)
    weight = jax.random.uniform(k_w, (C, C), minval=-bound, maxval=bound,
                                dtype=jnp.float32)   # (out, in)
    bias = jax.random.uniform(k_b, (C,), minval=-bound, maxval=bound,
                              dtype=jnp.float32)

    out = jax.block_until_ready(pa_forward(x, weight, bias))
    ref = _reference(x, weight, bias)
    assert out.shape == (N, C, H, W)
    assert jnp.allclose(out, ref, atol=1e-5, rtol=1e-5)

    # Ragged spatial size (H*W not a multiple of 128) exercises the pad path.
    x2 = jax.random.normal(k_x2, (1, C, 15, 15), dtype=jnp.float32)
    out2 = jax.block_until_ready(pa_forward(x2, weight, bias))
    assert jnp.allclose(out2, _reference(x2, weight, bias), atol=1e-5, rtol=1e-5)

    print("KERNEL_OK")
</pallas_src>

<mosaic_0001>
module attributes {stable_mosaic.version = 11 : i64} {
  func.func @_pa_kernel(%arg0: i32, %arg1: i32, %arg2: memref<4x4xf32, #tpu.memory_space<smem>>, %arg3: memref<4xf32, #tpu.memory_space<smem>>, %arg4: memref<1x4x256xf32, #tpu.memory_space<vmem>>, %arg5: memref<1x4x256xf32, #tpu.memory_space<vmem>>) attributes {dimension_semantics = [#tpu.dimension_semantics<parallel>, #tpu.dimension_semantics<parallel>], iteration_bounds = array<i64: 2, 1>, scalar_prefetch = 0 : i64, scratch_operands = 0 : i64, tpu.core_type = #tpu.core_type<tc>, window_params = [{transform_indices = @transform_0, window_bounds = array<i64: 4, 4>}, {transform_indices = @transform_1, window_bounds = array<i64: 4>}, {transform_indices = @transform_2, window_bounds = array<i64: 1, 4, 256>}, {transform_indices = @transform_3, window_bounds = array<i64: 1, 4, 256>}]} {
    %c0 = arith.constant 0 : index
    %c0_0 = arith.constant 0 : index
    %c0_1 = arith.constant 0 : index
    %0 = vector.load %arg4[%c0, %c0_0, %c0_1] : memref<1x4x256xf32, #tpu.memory_space<vmem>>, vector<1x4x256xf32>
    %1 = vector.shape_cast %0 : vector<1x4x256xf32> to vector<4x256xf32>
    %2 = vector.extract_strided_slice %1 {offsets = [0, 0], sizes = [1, 256], strides = [1, 1]} : vector<4x256xf32> to vector<1x256xf32>
    %c0_2 = arith.constant 0 : index
    %c0_3 = arith.constant 0 : index
    %3 = memref.load %arg2[%c0_2, %c0_3] : memref<4x4xf32, #tpu.memory_space<smem>>
    %4 = vector.broadcast %3 : f32 to vector<1x256xf32>
    %5 = arith.mulf %2, %4 : vector<1x256xf32>
    %6 = vector.extract_strided_slice %1 {offsets = [1, 0], sizes = [1, 256], strides = [1, 1]} : vector<4x256xf32> to vector<1x256xf32>
    %c0_4 = arith.constant 0 : index
    %c1 = arith.constant 1 : index
    %7 = memref.load %arg2[%c0_4, %c1] : memref<4x4xf32, #tpu.memory_space<smem>>
    %8 = vector.broadcast %7 : f32 to vector<1x256xf32>
    %9 = arith.mulf %6, %8 : vector<1x256xf32>
    %10 = arith.addf %5, %9 : vector<1x256xf32>
    %11 = vector.extract_strided_slice %1 {offsets = [2, 0], sizes = [1, 256], strides = [1, 1]} : vector<4x256xf32> to vector<1x256xf32>
    %c0_5 = arith.constant 0 : index
    %c2 = arith.constant 2 : index
    %12 = memref.load %arg2[%c0_5, %c2] : memref<4x4xf32, #tpu.memory_space<smem>>
    %13 = vector.broadcast %12 : f32 to vector<1x256xf32>
    %14 = arith.mulf %11, %13 : vector<1x256xf32>
    %15 = arith.addf %10, %14 : vector<1x256xf32>
    %16 = vector.extract_strided_slice %1 {offsets = [3, 0], sizes = [1, 256], strides = [1, 1]} : vector<4x256xf32> to vector<1x256xf32>
    %c0_6 = arith.constant 0 : index
    %c3 = arith.constant 3 : index
    %17 = memref.load %arg2[%c0_6, %c3] : memref<4x4xf32, #tpu.memory_space<smem>>
    %18 = vector.broadcast %17 : f32 to vector<1x256xf32>
    %19 = arith.mulf %16, %18 : vector<1x256xf32>
    %20 = arith.addf %15, %19 : vector<1x256xf32>
    %c0_7 = arith.constant 0 : index
    %21 = memref.load %arg3[%c0_7] : memref<4xf32, #tpu.memory_space<smem>>
    %22 = vector.broadcast %21 : f32 to vector<1x256xf32>
    %23 = arith.addf %20, %22 : vector<1x256xf32>
    %24 = vector.extract_strided_slice %1 {offsets = [0, 0], sizes = [1, 256], strides = [1, 1]} : vector<4x256xf32> to vector<1x256xf32>
    %c1_8 = arith.constant 1 : index
    %c0_9 = arith.constant 0 : index
    %25 = memref.load %arg2[%c1_8, %c0_9] : memref<4x4xf32, #tpu.memory_space<smem>>
    %26 = vector.broadcast %25 : f32 to vector<1x256xf32>
    %27 = arith.mulf %24, %26 : vector<1x256xf32>
    %28 = vector.extract_strided_slice %1 {offsets = [1, 0], sizes = [1, 256], strides = [1, 1]} : vector<4x256xf32> to vector<1x256xf32>
    %c1_10 = arith.constant 1 : index
    %c1_11 = arith.constant 1 : index
    %29 = memref.load %arg2[%c1_10, %c1_11] : memref<4x4xf32, #tpu.memory_space<smem>>
    %30 = vector.broadcast %29 : f32 to vector<1x256xf32>
    %31 = arith.mulf %28, %30 : vector<1x256xf32>
    %32 = arith.addf %27, %31 : vector<1x256xf32>
    %33 = vector.extract_strided_slice %1 {offsets = [2, 0], sizes = [1, 256], strides = [1, 1]} : vector<4x256xf32> to vector<1x256xf32>
    %c1_12 = arith.constant 1 : index
    %c2_13 = arith.constant 2 : index
    %34 = memref.load %arg2[%c1_12, %c2_13] : memref<4x4xf32, #tpu.memory_space<smem>>
    %35 = vector.broadcast %34 : f32 to vector<1x256xf32>
    %36 = arith.mulf %33, %35 : vector<1x256xf32>
    %37 = arith.addf %32, %36 : vector<1x256xf32>
    %38 = vector.extract_strided_slice %1 {offsets = [3, 0], sizes = [1, 256], strides = [1, 1]} : vector<4x256xf32> to vector<1x256xf32>
    %c1_14 = arith.constant 1 : index
    %c3_15 = arith.constant 3 : index
    %39 = memref.load %arg2[%c1_14, %c3_15] : memref<4x4xf32, #tpu.memory_space<smem>>
    %40 = vector.broadcast %39 : f32 to vector<1x256xf32>
    %41 = arith.mulf %38, %40 : vector<1x256xf32>
    %42 = arith.addf %37, %41 : vector<1x256xf32>
    %c1_16 = arith.constant 1 : index
    %43 = memref.load %arg3[%c1_16] : memref<4xf32, #tpu.memory_space<smem>>
    %44 = vector.broadcast %43 : f32 to vector<1x256xf32>
    %45 = arith.addf %42, %44 : vector<1x256xf32>
    %46 = vector.extract_strided_slice %1 {offsets = [0, 0], sizes = [1, 256], strides = [1, 1]} : vector<4x256xf32> to vector<1x256xf32>
    %c2_17 = arith.constant 2 : index
    %c0_18 = arith.constant 0 : index
    %47 = memref.load %arg2[%c2_17, %c0_18] : memref<4x4xf32, #tpu.memory_space<smem>>
    %48 = vector.broadcast %47 : f32 to vector<1x256xf32>
    %49 = arith.mulf %46, %48 : vector<1x256xf32>
    %50 = vector.extract_strided_slice %1 {offsets = [1, 0], sizes = [1, 256], strides = [1, 1]} : vector<4x256xf32> to vector<1x256xf32>
    %c2_19 = arith.constant 2 : index
    %c1_20 = arith.constant 1 : index
    %51 = memref.load %arg2[%c2_19, %c1_20] : memref<4x4xf32, #tpu.memory_space<smem>>
    %52 = vector.broadcast %51 : f32 to vector<1x256xf32>
    %53 = arith.mulf %50, %52 : vector<1x256xf32>
    %54 = arith.addf %49, %53 : vector<1x256xf32>
    %55 = vector.extract_strided_slice %1 {offsets = [2, 0], sizes = [1, 256], strides = [1, 1]} : vector<4x256xf32> to vector<1x256xf32>
    %c2_21 = arith.constant 2 : index
    %c2_22 = arith.constant 2 : index
    %56 = memref.load %arg2[%c2_21, %c2_22] : memref<4x4xf32, #tpu.memory_space<smem>>
    %57 = vector.broadcast %56 : f32 to vector<1x256xf32>
    %58 = arith.mulf %55, %57 : vector<1x256xf32>
    %59 = arith.addf %54, %58 : vector<1x256xf32>
    %60 = vector.extract_strided_slice %1 {offsets = [3, 0], sizes = [1, 256], strides = [1, 1]} : vector<4x256xf32> to vector<1x256xf32>
    %c2_23 = arith.constant 2 : index
    %c3_24 = arith.constant 3 : index
    %61 = memref.load %arg2[%c2_23, %c3_24] : memref<4x4xf32, #tpu.memory_space<smem>>
    %62 = vector.broadcast %61 : f32 to vector<1x256xf32>
    %63 = arith.mulf %60, %62 : vector<1x256xf32>
    %64 = arith.addf %59, %63 : vector<1x256xf32>
    %c2_25 = arith.constant 2 : index
    %65 = memref.load %arg3[%c2_25] : memref<4xf32, #tpu.memory_space<smem>>
    %66 = vector.broadcast %65 : f32 to vector<1x256xf32>
    %67 = arith.addf %64, %66 : vector<1x256xf32>
    %68 = vector.extract_strided_slice %1 {offsets = [0, 0], sizes = [1, 256], strides = [1, 1]} : vector<4x256xf32> to vector<1x256xf32>
    %c3_26 = arith.constant 3 : index
    %c0_27 = arith.constant 0 : index
    %69 = memref.load %arg2[%c3_26, %c0_27] : memref<4x4xf32, #tpu.memory_space<smem>>
    %70 = vector.broadcast %69 : f32 to vector<1x256xf32>
    %71 = arith.mulf %68, %70 : vector<1x256xf32>
    %72 = vector.extract_strided_slice %1 {offsets = [1, 0], sizes = [1, 256], strides = [1, 1]} : vector<4x256xf32> to vector<1x256xf32>
    %c3_28 = arith.constant 3 : index
    %c1_29 = arith.constant 1 : index
    %73 = memref.load %arg2[%c3_28, %c1_29] : memref<4x4xf32, #tpu.memory_space<smem>>
    %74 = vector.broadcast %73 : f32 to vector<1x256xf32>
    %75 = arith.mulf %72, %74 : vector<1x256xf32>
    %76 = arith.addf %71, %75 : vector<1x256xf32>
    %77 = vector.extract_strided_slice %1 {offsets = [2, 0], sizes = [1, 256], strides = [1, 1]} : vector<4x256xf32> to vector<1x256xf32>
    %c3_30 = arith.constant 3 : index
    %c2_31 = arith.constant 2 : index
    %78 = memref.load %arg2[%c3_30, %c2_31] : memref<4x4xf32, #tpu.memory_space<smem>>
    %79 = vector.broadcast %78 : f32 to vector<1x256xf32>
    %80 = arith.mulf %77, %79 : vector<1x256xf32>
    %81 = arith.addf %76, %80 : vector<1x256xf32>
    %82 = vector.extract_strided_slice %1 {offsets = [3, 0], sizes = [1, 256], strides = [1, 1]} : vector<4x256xf32> to vector<1x256xf32>
    %c3_32 = arith.constant 3 : index
    %c3_33 = arith.constant 3 : index
    %83 = memref.load %arg2[%c3_32, %c3_33] : memref<4x4xf32, #tpu.memory_space<smem>>
    %84 = vector.broadcast %83 : f32 to vector<1x256xf32>
    %85 = arith.mulf %82, %84 : vector<1x256xf32>
    %86 = arith.addf %81, %85 : vector<1x256xf32>
    %c3_34 = arith.constant 3 : index
    %87 = memref.load %arg3[%c3_34] : memref<4xf32, #tpu.memory_space<smem>>
    %88 = vector.broadcast %87 : f32 to vector<1x256xf32>
    %89 = arith.addf %86, %88 : vector<1x256xf32>
    %90 = tpu.concatenate %23, %45, %67, %89 in 0 : vector<1x256xf32>, vector<1x256xf32>, vector<1x256xf32>, vector<1x256xf32> -> vector<4x256xf32>
    %91 = arith.negf %90 : vector<4x256xf32>
    %92 = math.exp %91 : vector<4x256xf32>
    %cst = arith.constant 1.000000e+00 : f32
    %93 = vector.broadcast %cst : f32 to vector<4x256xf32>
    %94 = arith.addf %93, %92 : vector<4x256xf32>
    %95 = arith.divf %93, %94 : vector<4x256xf32>
    %96 = arith.mulf %1, %95 : vector<4x256xf32>
    %c0_35 = arith.constant 0 : index
    %c0_36 = arith.constant 0 : index
    %c0_37 = arith.constant 0 : index
    %97 = vector.load %arg5[%c0_35, %c0_36, %c0_37] : memref<1x4x256xf32, #tpu.memory_space<vmem>>, vector<1x4x256xf32>
    %98 = vector.shape_cast %97 : vector<1x4x256xf32> to vector<4x256xf32>
    %99 = vector.shape_cast %96 : vector<4x256xf32> to vector<1x4x256xf32>
    tpu.vector_store %arg5[%c0_35, %c0_36, %c0_37], %99 {strides = array<i32>} : memref<1x4x256xf32, #tpu.memory_space<vmem>>, vector<1x4x256xf32>,
    return
  }
  func.func @transform_0(%arg0: i32, %arg1: i32) -> (i32, i32) {
    %c0_i32 = arith.constant 0 : i32
    %c0_i32_0 = arith.constant 0 : i32
    %c0_i32_1 = arith.constant 0 : i32
    return %c0_i32, %c0_i32_0 : i32, i32
  }
  func.func @transform_1(%arg0: i32, %arg1: i32) -> i32 {
    %c0_i32 = arith.constant 0 : i32
    %c0_i32_0 = arith.constant 0 : i32
    return %c0_i32 : i32
  }
  func.func @transform_2(%arg0: i32, %arg1: i32) -> (i32, i32, i32) {
    %c0_i32 = arith.constant 0 : i32
    %c0_i32_0 = arith.constant 0 : i32
    return %arg0, %c0_i32, %arg1 : i32, i32, i32
  }
  func.func @transform_3(%arg0: i32, %arg1: i32) -> (i32, i32, i32) {
    %c0_i32 = arith.constant 0 : i32
    %c0_i32_0 = arith.constant 0 : i32
    return %arg0, %c0_i32, %arg1 : i32, i32, i32
  }
}

</mosaic_0001>

<bundles_post_ra>
// kernel: tpu_custom_call.1
= control target key start
LH: loop header
LB: loop body
LE: loop exit
PB: predicated region body
PF: predicated region fallthrough
CT: control target
= control target key end

     0   :  { %8 = vsyncpa [#allocation5], 0  ;;  %s1053_s0 = inlined_call_operand.hbm [shape: f32[4,4], index: 0, kind: input, shape index: {}]   ;;  %s1054_s1 = inlined_call_operand.hbm [shape: f32[4], index: 1, kind: input, shape index: {}]   ;;  %s1055_s2 = inlined_call_operand.hbm [shape: f32[2,4,256], index: 2, kind: input, shape index: {}]   ;;  %s1056_s3 = inlined_call_operand.hbm [shape: f32[2,4,256], index: 3, kind: output, shape index: {}]  }
   0x1   :  { %9 = vsyncpa [#allocation7], 0 }
   0x2   :  { %10 = vsyncpa [#allocation3], 0 }
   0x3   :  { %12 = vsyncpa [#allocation3 + $0x1], 0 }
   0x4   :  { %13 = vsyncpa [#allocation4], 0 }
   0x5   :  { %15 = vsyncpa [#allocation4 + $0x1], 0  ;;  %s875_s12 = smov 0   ;;  %s877_s13 = smov 0  }
   0x6   :  { %s879_s14 = smov 0   ;;  %s881_s15 = smov 0  }
   0x7   :  { %s883_s16 = smov 0   ;;  %s885_s17 = smov 0  }
   0x8 LB: > { %s557_s18 = sadd.s32 4294967295, %s851_s17   ;;  %s558_s19 = sadd.s32 4294967294, %s851_s17   ;;  %s851_s17 = sphi %s885_s17, %s21_s17   ;;  %s847_s16 = sphi %s883_s16, %s1066_s16   ;;  %s843_s15 = sphi %s881_s15, %s1065_s15   ;;  %s839_s14 = sphi %s879_s14, %s1064_s14   ;;  %s835_s13 = sphi %s877_s13, %s1063_s13   ;;  %s831_s12 = sphi %s875_s12, %s1062_s12  }
   0x9   : > { %p97_p0 = scmp.ne.s32.totalorder %s835_s13, %s831_s12  ;;  %p909_p1 = scmp.eq.s32.totalorder %s557_s18, 0 }
   0xa   : > { %p129_p2 = scmp.eq.s32.totalorder %s558_s19, 1  ;;  %p559_p4 = scmp.ge.s32.totalorder %s851_s17, 1 }
   0xb   : > { %p915_p3 = por %p909_p1, %p97_p0  ;;  %p136_p6 = scmp.lt.s32.totalorder %s851_s17, 3 }
   0xc   : > { %p920_p5 = por %p129_p2, %p97_p0  ;;  %s148_s25 = sshll.u32 %s1053_s0, 4  ;;  %s149_s25 = int_to_ptr.hbm [resolvable:$true] %s148_s25 }
   0xd   : > { %p928_p7 = pnand %p559_p4, %p136_p6  ;;  %p562_p8 = scmp.ge.s32.totalorder %s851_s17, 2 }
   0xe   : > { %s158_s29 = sshll.u32 %s1054_s1, 4  ;;  %s853_s30 = smov [#allocation2]   ;;  %s159_s29 = int_to_ptr.hbm [resolvable:$true] %s158_s29 }
   0xf   : > { %p622_p9 = pneg %p928_p7  ;;  %s854_s4 = smov [#allocation6]  }
  0x10   : > { %p123_p11 = scmp.eq.s32.totalorder %s557_s18, 1  ;;  %s33_s5 = sadd.s32 1, %s847_s16 }
  0x11   : > { %p623_p10 = pnand %p622_p9, %p909_p1  ;;  %p35_p12 = scmp.ge.s32.totalorder %s33_s5, 2 }
  0x12   : > { %s84_s6 = sadd.s32 1, %s839_s14  ;;  %p91_p13 = scmp.ne.s32.totalorder %s839_s14, %s835_s13 }
  0x13   : > { %625 = dma.hbm_to_smem (!%p623_p10), %s149_s25, 64, %s853_s30, [#allocation5]  }
  0x14   : > { %628 = dma.hbm_to_smem (!%p623_p10), %s159_s29, 16, %s854_s4, [#allocation7]  }
  0x15   : > { %p92_p0 = scmp.eq.s32.totalorder %s851_s17, 0  ;;  %s1068_s5 = smov (%p35_p12, %s33_s5), 0 }
  0x16   : > { %p947_p2 = por %p123_p11, %p91_p13  ;;  %p639_p4 = scmp.lt.s32.totalorder %s851_s17, 2 }
  0x17   : > { %s79_s8 = ssub.s32 %s847_s16, %s1068_s5  ;;  %s169_s9 = sand.u32 1, %s839_s14  }
  0x18   : > { %p82_p6 = scmp.eq.s32.totalorder %s79_s8, 0  ;;  %p93_p9 = por %p92_p0, %p91_p13 }
  0x19   : > { %s563_s10 = sshll.u32 %s169_s9, 3  ;;  %s608_s11 = sshll.u32 %s847_s16, 3 }
  0x1a   : > { %s957_s18 = scalar_select %p82_p6, %s839_s14, %s84_s6  }
  0x1b   : > { %s180_s24 = scalar_lea.hbm %s1055_s2, %s608_s11  ;;  %s173_s27 = scalar_lea.vmem [#allocation8], %s563_s10 }
  0x1c   : > { %s182_s25 = sshll.u32 %s180_s24, 4  ;;  %s184_s28 = sshll.u32 %s173_s27, 4  ;;  %s183_s25 = int_to_ptr.hbm [resolvable:$true] %s182_s25  ;;  %s185_s28 = int_to_ptr.vmem [resolvable:$true] %s184_s28 }
  0x1d   : > { %p630_p10 = pnand %p639_p4, %p93_p9  ;;  %s170_s29 = scalar_lea.sflag [#allocation3], %s169_s9 }
  0x1e   : > { %193 = sbr.rel (%p928_p7) target bundleno = 119 (0x77), region = 32 }
  0x1f   : > { %632 = dma.hbm_to_vmem [thread:$0]  (!%p630_p10), %s183_s25, 128, %s185_s28, %s170_s29  }
  0x23   : > { %814 = dma.done.wait (%p909_p1), [#allocation5], 64  }
  0x24   : > { %816 = vsyncadd (%p909_p1), [#allocation5], 4294967232 }
  0x25   : > { %818 = dma.done.wait (%p909_p1), [#allocation7], 16  }
  0x26   : > { %820 = vsyncadd (%p909_p1), [#allocation7], 4294967280  ;;  %s975_s30 = sand.u32 1, %s835_s13  }
  0x27   : > { %s569_s26 = sshll.u32 %s975_s30, 3  ;;  %s206_s4 = scalar_lea.sflag [#allocation3], %s975_s30 }
  0x28   : > { %s209_s6 = scalar_lea.vmem [#allocation8], %s569_s26 }
  0x29   : > { %822 = dma.done.wait (%p915_p3), %s206_s4, 128  }
  0x2a   : > { %824 = vsyncadd (%p915_p3), %s206_s4, 4294967168 }
  0x2b   : > { %215 = sfence }
  0x2c   : > { %s237_s8 = sld [smem:[#allocation2]]  ;;  %v987_v0 = vld [vmem:[%s209_s6] sm:$0xff]  ;;  %vm377_vm0 = vcmask 1040384   ;;  %vm380_vm1 = vcmask 1041408   ;;  %vm383_vm2 = vcmask 1042432   ;;  %vm427_vm11 = vcmask 1043456  }
  0x2d   : > { %s571_s20 = sld [smem:[#allocation2 + $0x1]] }
  0x2e   : > { %s573_s9 = sld [smem:[#allocation2 + $0x2]] }
  0x2f   : > { %s575_s10 = sld [smem:[#allocation2 + $0x3]] }
  0x30   : > { %s985_s11 = sld [smem:[#allocation6]] }
  0x31   : > { %s577_s19 = sld [smem:[#allocation2 + $0x80]] }
  0x32   : > { %v238_v1 = vstv %s237_s8  ;;  %s578_s23 = sld [smem:[#allocation2 + $0x81]] }
  0x33   : > { %v241_v2 = vstv %s571_s20  ;;  %s580_s24 = sld [smem:[#allocation2 + $0x82]]  ;;  %v239_v3 = vmul.f32 %v238_v1, %v987_v0 }
  0x34   : > { %v242_v4 = vmul.f32 %v241_v2, %v987_v0  ;;  %v249_v5 = vstv %s573_s9  ;;  %s582_s21 = sld [smem:[#allocation2 + $0x83]] }
  0x35   : > { %v250_v6 = vmul.f32 %v249_v5, %v987_v0  ;;  %v257_v7 = vstv %s575_s10  ;;  %s992_s25 = sld [smem:[#allocation6 + $0x1]] }
  0x36   : > { %v572_v8 = vrot.slane %v242_v4, 9  ;;  %v258_v9 = vmul.f32 %v257_v7, %v987_v0  ;;  %s585_s27 = sld [smem:[#allocation2 + $0x100]]  ;;  %v265_v32 = vstv %s985_s11  ;;  %s609_s11 = sshll.u32 %s843_s15, 3 }
  0x37   : > { %v574_v10 = vrot.slane %v250_v6, 10  ;;  %v268_v11 = vstv %s577_s19  ;;  %s586_s28 = sld [smem:[#allocation2 + $0x101]]  ;;  %s233_s15 = scalar_lea.vmem [#allocation9], %s569_s26 }
  0x38   : > { %v247_v12 = vadd.f32 %v572_v8, %v239_v3  ;;  %v271_v13 = vstv %s578_s23  ;;  %s588_s29 = sld [smem:[#allocation2 + $0x102]]  ;;  %v269_v14 = vmul.f32 %v268_v11, %v987_v0  ;;  %v576_v18 = vrot.slane %v258_v9, 11  ;;  %s781_s26 = scalar_lea.hbm %s1056_s3, 16 }
  0x39   : > { %v272_v15 = vmul.f32 %v271_v13, %v987_v0  ;;  %v279_v16 = vstv %s580_s24  ;;  %s590_s4 = sld [smem:[#allocation2 + $0x103]] }
  0x3a   : > { %v255_v17 = vadd.f32 %v574_v10, %v247_v12  ;;  %v280_v19 = vmul.f32 %v279_v16, %v987_v0  ;;  %v287_v20 = vstv %s582_s21  ;;  %s998_s6 = sld [smem:[#allocation6 + $0x2]]  ;;  %s446_s21 = scalar_lea.hbm %s1056_s3, %s609_s11 }
  0x3b   : > { %v579_v21 = vrot.slane %v272_v15, 9  ;;  %v288_v22 = vmul.f32 %v287_v20, %v987_v0  ;;  %s593_s8 = sld [smem:[#allocation2 + $0x180]]  ;;  %v295_v36 = vstv %s992_s25  ;;  %s448_s25 = sshll.u32 %s233_s15, 4  ;;  %s449_s25 = int_to_ptr.vmem [resolvable:$true] %s448_s25 }
  0x3c   : > { %v581_v23 = vrot.slane %v280_v19, 10  ;;  %v298_v24 = vstv %s585_s27  ;;  %s594_s20 = sld [smem:[#allocation2 + $0x181]]  ;;  %v263_v28 = vadd.f32 %v576_v18, %v255_v17  ;;  %s450_s27 = sshll.u32 %s446_s21, 4  ;;  %s451_s27 = int_to_ptr.hbm [resolvable:$true] %s450_s27 }
  0x3d   : > { %v277_v25 = vadd.f32 %v579_v21, %v269_v14  ;;  %v583_v26 = vrot.slane %v288_v22, 11  ;;  %v301_v27 = vstv %s586_s28  ;;  %s596_s9 = sld [smem:[#allocation2 + $0x182]]  ;;  %v299_v29 = vmul.f32 %v298_v24, %v987_v0  ;;  %s433_s28 = scalar_lea.sflag [#allocation4], %s975_s30 }
  0x3e   : > { %v302_v30 = vmul.f32 %v301_v27, %v987_v0  ;;  %v309_v31 = vstv %s588_s29  ;;  %s598_s10 = sld [smem:[#allocation2 + $0x183]]  ;;  %v266_v42 = vadd.f32 %v265_v32, %v263_v28  ;;  %s775_s29 = sshra.s32 %s451_s27, 4  ;;  %s776_s29 = int_to_ptr.hbm [resolvable:$true] %s775_s29 }
  0x3f   : > { %v285_v33 = vadd.f32 %v581_v23, %v277_v25  ;;  %v310_v34 = vmul.f32 %v309_v31, %v987_v0  ;;  %v317_v35 = vstv %s590_s4  ;;  %s600_s19 = sld [smem:[#allocation6 + $0x3]]  ;;  %s777_s4 = scalar_lea.hbm %s776_s29, 8 }
  0x40   : > { %v587_v37 = vrot.slane %v302_v30, 9  ;;  %v318_v38 = vmul.f32 %v317_v35, %v987_v0  ;;  %v325_v53 = vstv %s998_s6  ;;  %v358_v58 = vperm.slane %v266_v42, 0  ;;  %p778_p1 = scmp.ne.s32.totalorder %s776_s29, %s777_s4  ;;  %p782_p11 = scmp.lt.s32.totalorder %s776_s29, %s1056_s3 }
  0x41   : > { %v293_v39 = vadd.f32 %v583_v26, %v285_v33  ;;  %v589_v40 = vrot.slane %v310_v34, 10  ;;  %v328_v41 = vstv %s593_s8  ;;  %v359_v59 = vperm.slane %v266_v42, 4  ;;  %p783_p12 = scmp.lt.s32.totalorder %s781_s26, %s777_s4 }
  0x42   : > { %v307_v43 = vadd.f32 %v587_v37, %v299_v29  ;;  %v591_v44 = vrot.slane %v318_v38, 11  ;;  %v331_v45 = vstv %s594_s20  ;;  %v329_v47 = vmul.f32 %v328_v41, %v987_v0  ;;  %p779_p3 = pnand %p778_p1, %p947_p2 }
  0x43   : > { %v296_v46 = vadd.f32 %v295_v36, %v293_v39  ;;  %v332_v48 = vmul.f32 %v331_v45, %v987_v0  ;;  %v339_v49 = vstv %s596_s9  ;;  %p784_p13 = por %p783_p12, %p782_p11 }
  0x44   : > { %v315_v50 = vadd.f32 %v589_v40, %v307_v43  ;;  %v340_v51 = vmul.f32 %v339_v49, %v987_v0  ;;  %v347_v52 = vstv %s598_s10  ;;  %p780_p7 = pneg %p779_p3 }
  0x45   : > { %v595_v54 = vrot.slane %v332_v48, 9  ;;  %v348_v55 = vmul.f32 %v347_v52, %v987_v0  ;;  %v363_v62 = vperm.slane %v296_v46, 0  ;;  %v364_v63 = vperm.slane %v296_v46, 4 }
  0x46   : > { %v323_v56 = vadd.f32 %v591_v44, %v315_v50  ;;  %v597_v57 = vrot.slane %v340_v51, 10  ;;  %v355_v3 = vstv %s600_s19  ;;  %p785_p0 = pnand %p784_p13, %p780_p7 }
  0x47   : > { %v337_v60 = vadd.f32 %v595_v54, %v329_v47  ;;  %v599_v61 = vrot.slane %v348_v55, 11  ;;  %v378_v7 = vsel %vm377_vm0, %v358_v58, %v363_v62  ;;  %v379_v8 = vsel %vm377_vm0, %v359_v59, %v364_v63 }
  0x48   : > { %v326_v1 = vadd.f32 %v325_v53, %v323_v56 }
  0x49   : > { %v345_v2 = vadd.f32 %v597_v57, %v337_v60 }
  0x4a   : > { %v368_v4 = vperm.slane %v326_v1, 0  ;;  %v369_v5 = vperm.slane %v326_v1, 4 }
  0x4b   : > { %v353_v6 = vadd.f32 %v599_v61, %v345_v2 }
  0x4c   : > { %v381_v10 = vsel %vm380_vm1, %v378_v7, %v368_v4  ;;  %v382_v11 = vsel %vm380_vm1, %v379_v8, %v369_v5 }
  0x4d   : > { %v356_v9 = vadd.f32 %v355_v3, %v353_v6 }
  0x4f   : > { %v373_v12 = vperm.slane %v356_v9, 0  ;;  %v374_v13 = vperm.slane %v356_v9, 4 }
  0x51   : > { %v384_v14 = vsel %vm383_vm2, %v381_v10, %v373_v12  ;;  %v385_v15 = vsel %vm383_vm2, %v382_v11, %v374_v13 }
  0x52   : > { %v601_v16 = vmul.f32 -1.442695, %v384_v14  ;;  %v602_v17 = vmul.f32 -1.442695, %v385_v15 }
  0x54   : > { %693 = vpow2.f32 %v601_v16 }
  0x55   : > { %695 = vpow2.f32 %v602_v17 }
  0x5a   : > { %v694_v18 = vpop.eup %693 }
  0x5b   : > { %v696_v19 = vpop.eup %695  ;;  %v392_v20 = vadd.f32 1.0, %v694_v18 }
  0x5c   : > { %v393_v21 = vadd.f32 1.0, %v696_v19 }
  0x5d   : > { %697 = vrcp.f32 %v392_v20  ;;  %vm399_vm3 = vweird.f32 %v392_v20  ;;  %v403_v25 = vand.u32 2147483647, %v392_v20  ;;  %v405_v28 = vand.u32 2147483648, %v392_v20 }
  0x5e   : > { %699 = vrcp.f32 %v393_v21  ;;  %v420_v29 = vand.u32 2147483648, %v393_v21  ;;  %vm414_vm5 = vweird.f32 %v393_v21  ;;  %v418_v31 = vand.u32 2147483647, %v393_v21 }
  0x5f   : > { %v406_v35 = vor.u32 1.1754944e-38, %v405_v28  ;;  %vm404_vm9 = vcmp.eq.f32.partialorder %v403_v25, 8.507059e+37 }
  0x60   : > { %v421_v36 = vor.u32 1.1754944e-38, %v420_v29  ;;  %vm419_vm10 = vcmp.eq.f32.partialorder %v418_v31, 8.507059e+37 }
  0x63   : > { %v698_v22 = vpop.eup %697 }
  0x64   : > { %v700_v23 = vpop.eup %699  ;;  %v395_v24 = vmul.f32 %v698_v22, %v392_v20  ;;  %vm400_vm4 = vweird.f32 %v698_v22 }
  0x65   : > { %v410_v26 = vmul.f32 %v700_v23, %v393_v21  ;;  %vm415_vm6 = vweird.f32 %v700_v23  ;;  %vm401_vm7 = vmor %vm399_vm3, %vm400_vm4 }
  0x66   : > { %v396_v27 = vsub.f32 1.0, %v395_v24  ;;  %vm416_vm8 = vmor %vm414_vm5, %vm415_vm6 }
  0x67   : > { %v411_v30 = vsub.f32 1.0, %v410_v26 }
  0x68   : > { %v397_v32 = vmul.f32 %v698_v22, %v396_v27 }
  0x69   : > { %v412_v33 = vmul.f32 %v700_v23, %v411_v30 }
  0x6a   : > { %v398_v34 = vadd.f32 %v698_v22, %v397_v32 }
  0x6b   : > { %v413_v37 = vadd.f32 %v700_v23, %v412_v33 }
  0x6c   : > { %v402_v38 = vsel %vm401_vm7, %v698_v22, %v398_v34 }
  0x6d   : > { %v417_v39 = vsel %vm416_vm8, %v700_v23, %v413_v37  ;;  %v407_v40 = vsel %vm404_vm9, %v406_v35, %v402_v38 }
  0x6e   : > { %v422_v41 = vsel %vm419_vm10, %v421_v36, %v417_v39 }
  0x6f   : > { %v426_v42 = vrot.slane %v422_v41, 4 }
  0x71   : > { %v428_v43 = vsel %vm427_vm11, %v407_v40, %v426_v42 }
  0x72   : > { %v430_v44 = vmul.f32 %v428_v43, %v987_v0 }
  0x74   : > { %431 = vst [vmem:[%s233_s15] sm:$0xff] %v430_v44 }
  0x75   : > { %788 = shalt.err (!%p785_p0)
}
  0x76   : > { %620 = dma.vmem_to_hbm [thread:$0]  (%p947_p2), %s449_s25, 128, %s451_s27, %s433_s28  }
  0x77 PF: > { %s462_s30 = sand.u32 1, %s831_s12   ;;  %p634_p4 = pnand %p562_p8, %p920_p5 }
  0x78   : > { %s463_s10 = scalar_lea.sflag [#allocation4], %s462_s30 }
  0x79   : > { %p635_p6 = pneg %p634_p4 }
  0x7b   : > { %826 = dma.done.wait (%p635_p6), %s463_s10, 128  }
  0x7c   : > { %828 = vsyncadd (%p635_p6), %s463_s10, 4294967168  ;;  %s21_s17 = sadd.s32 1, %s851_s17   ;;  %s1062_s12 = smov %s835_s13 }
  0x7d   : > { %p18_p9 = scmp.ge.s32.totalorder %s21_s17, 4   ;;  %s1063_s13 = smov %s839_s14 }
  0x7e   : > { %s1064_s14 = smov %s957_s18  ;;  %s1065_s15 = smov %s847_s16 }
  0x7f   : > { %s1066_s16 = smov %s1068_s5  ;;  %20 = sbr.rel (!%p18_p9) target bundleno = 8 (0x8), region = 86 }
  0x84   :  { %469 = vsyncpa [#allocation3], 1 }
  0x85   :  { %471 = vsyncpa [#allocation3 + $0x1], 1 }
  0x86   :  { %472 = vsyncpa [#allocation4], 1 }
  0x87   :  { %474 = vsyncpa [#allocation4 + $0x1], 1 }
  0x88   :  { %475 = vsyncpa [#allocation5], 1 }
  0x89   :  { %477 = vsyncpa [#allocation5 + $0x1], 1 }
  0x8a   :  { %478 = vsyncpa [#allocation7], 1 }

</bundles_post_ra>
